<compile_context>
chip_gen: v7x
topology: tpu7x:2x2x1
jax: 0.10.0
libtpu: 0.0.40
codegen_flags: <defaults>
</compile_context>

<pallas_src>
import functools

import jax
import jax.numpy as jnp
from jax.experimental import pallas as pl
from jax.experimental.pallas import tpu as pltpu


_VMEM_LIMIT_BYTES = 32 * 1024 * 1024  # safe on v5e/v6e/v7x, >> what we use


def _pick_block_batch(B, C, L, itemsize, target_bytes=2 * 1024 * 1024):
    """Batch instances per grid step: ~2 MiB blocks, >= 2 grid steps if B > 1."""
    per_instance = max(1, C * L * itemsize)
    bb = max(1, target_bytes // per_instance)
    bb = int(min(bb, B))
    if B > 1 and pl.cdiv(B, bb) < 2:
        bb = pl.cdiv(B, 2)   # give both v7x TensorCores work
    return int(bb)


# -----------------------------------------------------------------------------
# Kernels (internal layout: x is (Bb, C, L); L on lanes, reduce over axis=-1)
# -----------------------------------------------------------------------------
def _revin_norm_kernel(x_ref, w_ref, b_ref, y_ref, stats_ref, *, eps):
    # x_ref:     (Bb, C, L)   batch block, lane-dense on L
    # w_ref:     (C, 1)       affine weight
    # b_ref:     (C, 1)       affine bias
    # y_ref:     (Bb, C, L)   normalized output
    # stats_ref: (Bb, C, 2)   [:, :, 0] = mean, [:, :, 1] = stdev (f32)
    x = x_ref[...]
    L = x.shape[-1]
    inv_n = 1.0 / float(L)

    # Single-pass statistics, accumulated in f32.
    xf = x.astype(jnp.float32)
    s1 = jnp.sum(xf, axis=-1, keepdims=True)            # (Bb, C, 1)
    s2 = jnp.sum(xf * xf, axis=-1, keepdims=True)       # (Bb, C, 1)
    mean = s1 * inv_n
    var = jnp.maximum(s2 * inv_n - mean * mean, 0.0)    # unbiased=False
    stdev = jnp.sqrt(var + eps)

    # Per-channel (tiny tile) reciprocal; fold affine into one FMA per element.
    inv_std = pl.reciprocal(stdev, approx=False)        # (Bb, C, 1)
    w = w_ref[...].astype(jnp.float32)                  # (C, 1) -> bcast
    b = b_ref[...].astype(jnp.float32)
    scale = w * inv_std                                 # (Bb, C, 1)
    shift = b - mean * scale                            # (Bb, C, 1)

    y = x * scale.astype(x.dtype) + shift.astype(x.dtype)
    y_ref[...] = y.astype(y_ref.dtype)

    stats_ref[:, :, 0:1] = mean.astype(stats_ref.dtype)
    stats_ref[:, :, 1:2] = stdev.astype(stats_ref.dtype)


def _revin_denorm_kernel(x_ref, stats_ref, w_ref, b_ref, y_ref, *, eps):
    # x_ref:     (Bb, C, L)
    # stats_ref: (Bb, C, 2)  [:, :, 0] = mean, [:, :, 1] = stdev (f32)
    # w_ref/b_ref: (C, 1)
    x = x_ref[...]
    stats = stats_ref[...].astype(jnp.float32)
    mean = stats[:, :, 0:1]                              # (Bb, C, 1)
    stdev = stats[:, :, 1:2]                             # (Bb, C, 1)

    w = w_ref[...].astype(jnp.float32)                   # (C, 1)
    b = b_ref[...].astype(jnp.float32)
    inv_w = pl.reciprocal(w + eps * eps, approx=False)   # tiny per-channel divide
    scale = stdev * inv_w                                # (Bb, C, 1)
    shift = mean - b * scale                             # (Bb, C, 1)

    y = x * scale.astype(x.dtype) + shift.astype(x.dtype)
    y_ref[...] = y.astype(y_ref.dtype)


# -----------------------------------------------------------------------------
# Wrappers (pallas_call plumbing; external layout matches PyTorch: (B, L, C))
# -----------------------------------------------------------------------------
def revin_norm(x, weight, bias, *, eps=1e-5, block_batch=None):
    """x: (B, L, C); weight/bias: (C,). Returns (y, mean, stdev) in (B,L,C)/(B,1,C)."""
    B, L, C = x.shape
    x_t = jnp.transpose(x, (0, 2, 1))                    # (B, C, L): lane-dense on L
    w2 = weight.reshape(C, 1).astype(jnp.float32)
    b2 = bias.reshape(C, 1).astype(jnp.float32)

    bb = block_batch or _pick_block_batch(B, C, L, x.dtype.itemsize)
    grid = (pl.cdiv(B, bb),)

    kernel = functools.partial(_revin_norm_kernel, eps=eps)
    y_t, stats = pl.pallas_call(
        kernel,
        out_shape=(
            jax.ShapeDtypeStruct((B, C, L), x.dtype),
            jax.ShapeDtypeStruct((B, C, 2), jnp.float32),
        ),
        grid_spec=pltpu.PrefetchScalarGridSpec(
            num_scalar_prefetch=0,
            grid=grid,
            in_specs=[
                pl.BlockSpec((bb, C, L), lambda i: (i, 0, 0)),
                pl.BlockSpec((C, 1), lambda i: (0, 0)),
                pl.BlockSpec((C, 1), lambda i: (0, 0)),
            ],
            out_specs=[
                pl.BlockSpec((bb, C, L), lambda i: (i, 0, 0)),
                pl.BlockSpec((bb, C, 2), lambda i: (i, 0, 0)),
            ],
        ),
        compiler_params=pltpu.CompilerParams(
            dimension_semantics=("parallel",),
            vmem_limit_bytes=_VMEM_LIMIT_BYTES),
    )(x_t, w2, b2)

    y = jnp.transpose(y_t, (0, 2, 1))                    # back to (B, L, C)
    mean = stats[:, :, 0][:, None, :]                    # (B, 1, C)
    stdev = stats[:, :, 1][:, None, :]                   # (B, 1, C)
    return y, mean, stdev


def revin_denorm(x, mean, stdev, weight, bias, *, eps=1e-5, block_batch=None):
    """x: (B, L, C); mean/stdev: (B, 1, C); weight/bias: (C,)."""
    B, L, C = x.shape
    x_t = jnp.transpose(x, (0, 2, 1))                    # (B, C, L)
    stats = jnp.concatenate(
        [jnp.transpose(mean.astype(jnp.float32), (0, 2, 1)),
         jnp.transpose(stdev.astype(jnp.float32), (0, 2, 1))],
        axis=-1)                                         # (B, C, 2)
    w2 = weight.reshape(C, 1).astype(jnp.float32)
    b2 = bias.reshape(C, 1).astype(jnp.float32)

    bb = block_batch or _pick_block_batch(B, C, L, x.dtype.itemsize)
    grid = (pl.cdiv(B, bb),)

    kernel = functools.partial(_revin_denorm_kernel, eps=eps)
    y_t = pl.pallas_call(
        kernel,
        out_shape=jax.ShapeDtypeStruct((B, C, L), x.dtype),
        grid_spec=pltpu.PrefetchScalarGridSpec(
            num_scalar_prefetch=0,
            grid=grid,
            in_specs=[
                pl.BlockSpec((bb, C, L), lambda i: (i, 0, 0)),
                pl.BlockSpec((bb, C, 2), lambda i: (i, 0, 0)),
                pl.BlockSpec((C, 1), lambda i: (0, 0)),
                pl.BlockSpec((C, 1), lambda i: (0, 0)),
            ],
            out_specs=pl.BlockSpec((bb, C, L), lambda i: (i, 0, 0)),
        ),
        compiler_params=pltpu.CompilerParams(
            dimension_semantics=("parallel",),
            vmem_limit_bytes=_VMEM_LIMIT_BYTES),
    )(x_t, stats, w2, b2)

    return jnp.transpose(y_t, (0, 2, 1))                 # (B, L, C)


class RevINPallas:
    """Stateful wrapper mirroring the PyTorch RevIN module (affine=True)."""

    def __init__(self, num_features, eps=1e-5):
        self.num_features = num_features
        self.eps = eps
        # Deterministic init, identical to nn.Parameter(torch.ones/zeros).
        self.affine_weight = jnp.ones((num_features,), jnp.float32)
        self.affine_bias = jnp.zeros((num_features,), jnp.float32)
        self.mean = None
        self.stdev = None

    def __call__(self, x, mode: str):
        if mode == "norm":
            y, self.mean, self.stdev = revin_norm(
                x, self.affine_weight, self.affine_bias, eps=self.eps)
            return y
        elif mode == "denorm":
            return revin_denorm(
                x, self.mean, self.stdev, self.affine_weight,
                self.affine_bias, eps=self.eps)
        else:
            raise NotImplementedError


# -----------------------------------------------------------------------------
# Reference (pure JAX) for verification
# -----------------------------------------------------------------------------
def _ref_norm(x, w, b, eps):
    mean = jnp.mean(x, axis=1, keepdims=True)
    var = jnp.mean((x - mean) ** 2, axis=1, keepdims=True)
    stdev = jnp.sqrt(var + eps)
    return ((x - mean) / stdev) * w + b, mean, stdev


def _ref_denorm(x, mean, stdev, w, b, eps):
    return ((x - b) / (w + eps * eps)) * stdev + mean


if __name__ == "__main__":
    B, L, C = 4, 256, 8   # batch, sequence length, num_features
    key = jax.random.PRNGKey(0)
    x = jax.random.normal(key, (B, L, C), dtype=jnp.float32) * 3.0 + 1.5

    revin = RevINPallas(num_features=C, eps=1e-5)

    # norm pass
    y = revin(x, "norm")
    y = jax.block_until_ready(y)

    # denorm pass (round trip)
    x_rec = revin(y, "denorm")
    x_rec = jax.block_until_ready(x_rec)

    # verify against pure-JAX reference
    y_ref, mean_ref, std_ref = _ref_norm(
        x, revin.affine_weight, revin.affine_bias, revin.eps)
    x_rec_ref = _ref_denorm(
        y_ref, mean_ref, std_ref, revin.affine_weight, revin.affine_bias,
        revin.eps)

    assert jnp.allclose(y, y_ref, atol=1e-5, rtol=1e-5)
    assert jnp.allclose(revin.mean, mean_ref, atol=1e-5, rtol=1e-5)
    assert jnp.allclose(revin.stdev, std_ref, atol=1e-5, rtol=1e-5)
    assert jnp.allclose(x_rec, x_rec_ref, atol=1e-4, rtol=1e-4)
    assert jnp.allclose(x_rec, x, atol=1e-4, rtol=1e-4)  # round-trip recovers x

    print("KERNEL_OK")
</pallas_src>

<mosaic_0001>
module attributes {stable_mosaic.version = 11 : i64} {
  func.func @_revin_norm_kernel(%arg0: i32, %arg1: memref<2x8x256xf32, #tpu.memory_space<vmem>>, %arg2: memref<8x1xf32, #tpu.memory_space<vmem>>, %arg3: memref<8x1xf32, #tpu.memory_space<vmem>>, %arg4: memref<2x8x256xf32, #tpu.memory_space<vmem>>, %arg5: memref<2x8x2xf32, #tpu.memory_space<vmem>>) attributes {dimension_semantics = [#tpu.dimension_semantics<parallel>], iteration_bounds = array<i64: 2>, scalar_prefetch = 0 : i64, scratch_operands = 0 : i64, tpu.core_type = #tpu.core_type<tc>, window_params = [{transform_indices = @transform_0, window_bounds = array<i64: 2, 8, 256>}, {pipeline_mode = #tpu.pipeline_mode<synchronous>, transform_indices = @transform_1, window_bounds = array<i64: 8, 1>}, {pipeline_mode = #tpu.pipeline_mode<synchronous>, transform_indices = @transform_2, window_bounds = array<i64: 8, 1>}, {transform_indices = @transform_3, window_bounds = array<i64: 2, 8, 256>}, {transform_indices = @transform_4, window_bounds = array<i64: 2, 8, 2>}]} {
    %c0 = arith.constant 0 : index
    %c0_0 = arith.constant 0 : index
    %c0_1 = arith.constant 0 : index
    %0 = vector.load %arg1[%c0, %c0_0, %c0_1] : memref<2x8x256xf32, #tpu.memory_space<vmem>>, vector<2x8x256xf32>
    %cst = arith.constant dense<0.000000e+00> : vector<2x8xf32>
    %1 = vector.multi_reduction <add>, %0, %cst [2] : vector<2x8x256xf32> to vector<2x8xf32>
    %2 = vector.shape_cast %1 : vector<2x8xf32> to vector<2x8x1xf32>
    %3 = arith.mulf %0, %0 : vector<2x8x256xf32>
    %cst_2 = arith.constant dense<0.000000e+00> : vector<2x8xf32>
    %4 = vector.multi_reduction <add>, %3, %cst_2 [2] : vector<2x8x256xf32> to vector<2x8xf32>
    %5 = vector.shape_cast %4 : vector<2x8xf32> to vector<2x8x1xf32>
    %cst_3 = arith.constant 3.906250e-03 : f32
    %6 = vector.broadcast %cst_3 : f32 to vector<2x8x1xf32>
    %7 = arith.mulf %2, %6 : vector<2x8x1xf32>
    %cst_4 = arith.constant 3.906250e-03 : f32
    %8 = vector.broadcast %cst_4 : f32 to vector<2x8x1xf32>
    %9 = arith.mulf %5, %8 : vector<2x8x1xf32>
    %10 = arith.mulf %7, %7 : vector<2x8x1xf32>
    %11 = arith.subf %9, %10 : vector<2x8x1xf32>
    %cst_5 = arith.constant 0.000000e+00 : f32
    %12 = vector.broadcast %cst_5 : f32 to vector<2x8x1xf32>
    %13 = arith.maximumf %11, %12 : vector<2x8x1xf32>
    %cst_6 = arith.constant 9.99999974E-6 : f32
    %14 = vector.broadcast %cst_6 : f32 to vector<2x8x1xf32>
    %15 = arith.addf %13, %14 : vector<2x8x1xf32>
    %16 = math.sqrt %15 : vector<2x8x1xf32>
    %17 = tpu.reciprocal %16 : vector<2x8x1xf32> -> vector<2x8x1xf32>
    %c0_7 = arith.constant 0 : index
    %c0_8 = arith.constant 0 : index
    %18 = vector.load %arg2[%c0_7, %c0_8] : memref<8x1xf32, #tpu.memory_space<vmem>>, vector<8x1xf32>
    %c0_9 = arith.constant 0 : index
    %c0_10 = arith.constant 0 : index
    %19 = vector.load %arg3[%c0_9, %c0_10] : memref<8x1xf32, #tpu.memory_space<vmem>>, vector<8x1xf32>
    %20 = vector.shape_cast %18 : vector<8x1xf32> to vector<1x8x1xf32>
    %21 = vector.broadcast %20 : vector<1x8x1xf32> to vector<2x8x1xf32>
    %22 = arith.mulf %21, %17 : vector<2x8x1xf32>
    %23 = arith.mulf %7, %22 : vector<2x8x1xf32>
    %24 = vector.shape_cast %19 : vector<8x1xf32> to vector<1x8x1xf32>
    %25 = vector.broadcast %24 : vector<1x8x1xf32> to vector<2x8x1xf32>
    %26 = arith.subf %25, %23 : vector<2x8x1xf32>
    %27 = vector.broadcast %22 : vector<2x8x1xf32> to vector<2x8x256xf32>
    %28 = arith.mulf %0, %27 : vector<2x8x256xf32>
    %29 = vector.broadcast %26 : vector<2x8x1xf32> to vector<2x8x256xf32>
    %30 = arith.addf %28, %29 : vector<2x8x256xf32>
    %c0_11 = arith.constant 0 : index
    %c0_12 = arith.constant 0 : index
    %c0_13 = arith.constant 0 : index
    %31 = vector.load %arg4[%c0_11, %c0_12, %c0_13] : memref<2x8x256xf32, #tpu.memory_space<vmem>>, vector<2x8x256xf32>
    tpu.vector_store %arg4[%c0_11, %c0_12, %c0_13], %30 {strides = array<i32>} : memref<2x8x256xf32, #tpu.memory_space<vmem>>, vector<2x8x256xf32>,
    %c0_14 = arith.constant 0 : index
    %c0_15 = arith.constant 0 : index
    %c0_16 = arith.constant 0 : index
    %32 = vector.load %arg5[%c0_14, %c0_15, %c0_16] : memref<2x8x2xf32, #tpu.memory_space<vmem>>, vector<2x8x1xf32>
    tpu.vector_store %arg5[%c0_14, %c0_15, %c0_16], %7 {strides = array<i32>} : memref<2x8x2xf32, #tpu.memory_space<vmem>>, vector<2x8x1xf32>,
    %c0_17 = arith.constant 0 : index
    %c0_18 = arith.constant 0 : index
    %c1 = arith.constant 1 : index
    %33 = vector.load %arg5[%c0_17, %c0_18, %c1] : memref<2x8x2xf32, #tpu.memory_space<vmem>>, vector<2x8x1xf32>
    tpu.vector_store %arg5[%c0_17, %c0_18, %c1], %16 {strides = array<i32>} : memref<2x8x2xf32, #tpu.memory_space<vmem>>, vector<2x8x1xf32>,
    return
  }
  func.func @transform_0(%arg0: i32) -> (i32, i32, i32) {
    %c0_i32 = arith.constant 0 : i32
    %c0_i32_0 = arith.constant 0 : i32
    %c0_i32_1 = arith.constant 0 : i32
    return %arg0, %c0_i32, %c0_i32_0 : i32, i32, i32
  }
  func.func @transform_1(%arg0: i32) -> (i32, i32) {
    %c0_i32 = arith.constant 0 : i32
    %c0_i32_0 = arith.constant 0 : i32
    %c0_i32_1 = arith.constant 0 : i32
    return %c0_i32, %c0_i32_0 : i32, i32
  }
  func.func @transform_2(%arg0: i32) -> (i32, i32) {
    %c0_i32 = arith.constant 0 : i32
    %c0_i32_0 = arith.constant 0 : i32
    %c0_i32_1 = arith.constant 0 : i32
    return %c0_i32, %c0_i32_0 : i32, i32
  }
  func.func @transform_3(%arg0: i32) -> (i32, i32, i32) {
    %c0_i32 = arith.constant 0 : i32
    %c0_i32_0 = arith.constant 0 : i32
    %c0_i32_1 = arith.constant 0 : i32
    return %arg0, %c0_i32, %c0_i32_0 : i32, i32, i32
  }
  func.func @transform_4(%arg0: i32) -> (i32, i32, i32) {
    %c0_i32 = arith.constant 0 : i32
    %c0_i32_0 = arith.constant 0 : i32
    %c0_i32_1 = arith.constant 0 : i32
    return %arg0, %c0_i32, %c0_i32_0 : i32, i32, i32
  }
}

</mosaic_0001>

<bundles_post_ra>
// kernel: tpu_custom_call.1
= control target key start
LH: loop header
LB: loop body
LE: loop exit
PB: predicated region body
PF: predicated region fallthrough
CT: control target
= control target key end

     0   :  { %10 = vsyncpa [#allocation3], 0  ;;  %s868_s0 = inlined_call_operand.hbm [shape: f32[4,8,256], index: 0, kind: input, shape index: {}]   ;;  %s869_s1 = inlined_call_operand.vmem [shape: f32[8,1], index: 1, kind: input, shape index: {}]   ;;  %s870_s2 = inlined_call_operand.vmem [shape: f32[8,1], index: 2, kind: input, shape index: {}]   ;;  %s871_s3 = inlined_call_operand.hbm [shape: f32[4,8,256], index: 3, kind: output, shape index: {0}]   ;;  %s872_s4 = inlined_call_operand.vmem [shape: f32[4,8,2], index: 4, kind: output, shape index: {1}]  }
   0x1   :  { %12 = vsyncpa [#allocation3 + $0x1], 0 }
   0x2   :  { %13 = vsyncpa [#allocation4], 0 }
   0x3   :  { %15 = vsyncpa [#allocation4 + $0x1], 0  ;;  %s662_s15 = smov 0   ;;  %s664_s16 = smov 0  }
   0x4   :  { %s666_s17 = smov 0   ;;  %s668_s18 = smov 0  }
   0x5 LB: > { %s683_s19 = sadd.s32 4294967295, %s628_s18   ;;  %s449_s20 = sadd.s32 4294967294, %s628_s18   ;;  %s628_s18 = sphi %s668_s18, %s885_s18   ;;  %s624_s17 = sphi %s666_s17, %s884_s17   ;;  %s620_s16 = sphi %s664_s16, %s883_s16   ;;  %s616_s15 = sphi %s662_s15, %s882_s15  }
   0x6   : > { %s687_s21 = sadd.s32 1, %s628_s18   ;;  %s28_s22 = sadd.s32 1, %s624_s17 }
   0x7   : > { %s25_s23 = ssub.s32 %s628_s18, %s687_s21  ;;  %p35_p0 = scmp.ne.s32.totalorder %s624_s17, %s620_s16 }
   0x8   : > { %p26_p1 = scmp.eq.s32.totalorder %s25_s23, 0  ;;  %p36_p2 = scmp.eq.s32.totalorder %s628_s18, 0 }
   0x9   : > { %p41_p3 = scmp.ne.s32.totalorder %s620_s16, %s616_s15  ;;  %p42_p4 = scmp.eq.s32.totalorder %s683_s19, 0 }
   0xa   : > { %s699_s24 = scalar_select %p26_p1, %s624_s17, %s28_s22  }
   0xb   : > { %p701_p5 = por %p36_p2, %p35_p0  ;;  %p705_p6 = por %p42_p4, %p41_p3 }
   0xc   : > { %p107_p7 = scmp.eq.s32.totalorder %s683_s19, 1  ;;  %p113_p8 = scmp.eq.s32.totalorder %s449_s20, 1 }
   0xd   : > { %p483_p10 = scmp.lt.s32.totalorder %s628_s18, 2  ;;  %s165_s29 = sand.u32 1, %s624_s17  }
   0xe   : > { %p712_p11 = por %p107_p7, %p35_p0  ;;  %p716_p12 = por %p113_p8, %p41_p3 }
   0xf   : > { %s468_s30 = sshll.u32 %s628_s18, 9  ;;  %s452_s5 = sshll.u32 %s165_s29, 5 }
  0x10   : > { %s876_s27 = scalar_select %p712_p11, 1, 0 }
  0x11   : > { %s877_s28 = scalar_select %p716_p12, 1, 0 }
  0x12   : > { %s725_s8 = scalar_lea.hbm %s868_s0, %s468_s30  ;;  %s169_s9 = scalar_lea.vmem [#allocation2], %s452_s5 }
  0x13   : > { %s177_s10 = sshll.u32 %s169_s9, 4  ;;  %p729_p13 = pnand %p483_p10, %p701_p5  ;;  %s733_s10 = int_to_ptr.vmem [resolvable:$true] %s177_s10 }
  0x14   : > { %s735_s12 = scalar_lea.sflag [#allocation3], %s165_s29  ;;  %s532_s13 = scalar_lea.hbm %s725_s8, 512 }
  0x15   : > { %p533_p0 = scmp.ne.s32.totalorder %s725_s8, %s532_s13  ;;  %p534_p1 = pneg %p729_p13 }
  0x16   : > { %s537_s22 = scalar_lea.hbm %s868_s0, 1024  ;;  %p538_p4 = scmp.lt.u32.totalorder %s725_s8, %s868_s0 }
  0x17   : > { %p535_p2 = pnand %p534_p1, %p533_p0  ;;  %p539_p5 = scmp.lt.u32.totalorder %s537_s22, %s532_s13 }
  0x18   : > { %p541_p8 = scmp.lt.u32.totalorder %s532_s13, %s725_s8 }
  0x19   : > { %p536_p3 = pneg %p535_p2  ;;  %p540_p7 = por %p539_p5, %p538_p4 }
  0x1b   : > { %p542_p10 = por %p541_p8, %p540_p7 }
  0x1d   : > { %p543_p9 = pnand %p542_p10, %p536_p3 }
  0x1f   : > { %546 = shalt.err (!%p543_p9)
}
  0x20   : > { %s547_s29 = scalar_lea.vmem %s733_s10, 512  ;;  %s630_s30 = smov [#allocation2]  }
  0x21   : > { %p548_p0 = scmp.ne.s32.totalorder %s733_s10, %s547_s29  ;;  %s552_s5 = sshll.u32 %s630_s30, 4  ;;  %s553_s5 = int_to_ptr.vmem [resolvable:$false] %s552_s5 }
  0x22   : > { %s554_s6 = scalar_lea.vmem %s553_s5, 1024  ;;  %p555_p11 = scmp.lt.s32.totalorder %s733_s10, %s553_s5 }
  0x23   : > { %p550_p2 = pnand %p548_p0, %p534_p1  ;;  %p556_p4 = scmp.lt.s32.totalorder %s554_s6, %s547_s29 }
  0x25   : > { %p551_p12 = pneg %p550_p2  ;;  %p557_p5 = por %p556_p4, %p555_p11 }
  0x27   : > { %p558_p7 = pnand %p557_p5, %p551_p12 }
  0x29   : > { %561 = shalt.err (!%p558_p7)
}
  0x2a   : > { %s631_s7 = smov 256   ;;  %s632_s9 = smov 16  }
  0x2b   : > { %478 = dma.hbm_to_vmem [thread:$0]  (!%p729_p13), %s725_s8, 512, %s733_s10, %s735_s12, %s631_s7, %s631_s7, %s632_s9  }
  0x2c   : > { %p456_p9 = scmp.ge.s32.totalorder %s628_s18, 1  ;;  %p185_p1 = scmp.lt.s32.totalorder %s628_s18, 3 }
  0x2e   : > { %p186_p3 = pnand %p456_p9, %p185_p1 }
  0x2f   : > { %s766_s13 = sand.u32 (!%p186_p3), 1, %s620_s16  }
  0x30   : > { %189 = sbr.rel (%p186_p3) target bundleno = 396 (0x18c), region = 32  ;;  %s457_s14 = sshll.u32 (!%p186_p3), %s766_s13, 5 }
  0x31   : > { %s192_s20 = scalar_lea.sflag (!%p186_p3), [#allocation3], %s766_s13  ;;  %s195_s22 = scalar_lea.vmem (!%p186_p3), [#allocation2], %s457_s14 }
  0x37   : > { %607 = dma.done.wait (%p705_p6), %s192_s20, 512  }
  0x38   : > { %609 = vsyncadd (%p705_p6), %s192_s20, 4294966784  ;;  %v776_v0 = vld [vmem:[%s195_s22] sm:$0xff]  ;;  %v778_v1 = vld [vmem:[%s195_s22 + $0x8] sm:$0xff]  ;;  %v633_v12 = vmov 0   ;;  %s459_s26 = sshll.u32 %s683_s19, 1  ;;  %vm321_vm0 = vcmask 7168  }
  0x39   : > { %v780_v2 = vld [vmem:[%s195_s22 + $0x10] sm:$0xff]  ;;  %v237_v3 = vadd.f32 %v778_v1, %v776_v0  ;;  %v243_v4 = vmul.f32 %v776_v0, %v776_v0  ;;  %v244_v5 = vmul.f32 %v778_v1, %v778_v1  ;;  %v788_v6 = vld [vmem:[%s195_s22 + $0x18] sm:$0xff]  ;;  %522 = vset.pattern.permute.xlu0 %v633_v12  ;;  %523 = vset.pattern.permute.xlu1 %v633_v12  ;;  %p228_p6 = scmp.lt.s32.totalorder %s459_s26, 3  ;;  %vm324_vm2 = vcmask 15368   ;;  %v281_v39 = vld [vmem:[%s869_s1] sm:$0xff]  ;;  %s217_s5 = scalar_lea.vmem [#allocation5], %s457_s14 }
  0x3a   : > { %v245_v7 = vmul.f32 %v780_v2, %v780_v2  ;;  %v246_v8 = vmul.f32 %v788_v6, %v788_v6  ;;  %v240_v10 = vadd.f32 %v788_v6, %v780_v2  ;;  %v282_v45 = vld [vmem:[%s870_s2] sm:$0xff]  ;;  %s347_s6 = sshll.u32 %s217_s5, 4  ;;  %s470_s7 = sshll.u32 %s683_s19, 9  ;;  %s819_s6 = int_to_ptr.vmem [resolvable:$true] %s347_s6 }
  0x3b   : > { %238 = vadd.xlane.f32.xlu0 %v237_v3  ;;  %v247_v9 = vadd.f32 %v244_v5, %v243_v4  ;;  %s887_s26 = smov (!%p228_p6, %s459_s26), 3  ;;  %s824_s20 = scalar_lea.hbm %s871_s3, %s470_s7 }
  0x3c   : > { %v250_v11 = vadd.f32 %v246_v8, %v245_v7  ;;  %s460_s8 = sshll.u32 %s887_s26, 3  ;;  %s328_s19 = scalar_lea.sflag [#allocation4], %s766_s13 }
  0x3d   : > { %248 = vadd.xlane.f32.xlu1 %v247_v9  ;;  %s800_s12 = scalar_lea.vmem %s872_s4, %s460_s8  ;;  %s562_s22 = scalar_lea.vmem %s819_s6, 512 }
  0x3e   : > { %p563_p11 = scmp.ne.s32.totalorder %s819_s6, %s562_s22  ;;  %p879_p12 = scmp.ne.s32.totalorder %s876_s27, 0 }
  0x3f   : > { %241 = vadd.xlane.f32.xlu0 %v240_v10  ;;  %s634_s26 = smov [#allocation5]  }
  0x40   : > { %p564_p13 = pnand %p563_p11, %p879_p12  ;;  %s566_s8 = sshll.u32 %s634_s26, 4  ;;  %s567_s8 = int_to_ptr.vmem [resolvable:$false] %s566_s8 }
  0x41   : > { %251 = vadd.xlane.f32.xlu1 %v250_v11  ;;  %s568_s10 = scalar_lea.vmem %s567_s8, 1024  ;;  %p569_p10 = scmp.lt.s32.totalorder %s819_s6, %s567_s8 }
  0x42   : > { %p565_p8 = pneg %p564_p13  ;;  %p570_p0 = scmp.lt.s32.totalorder %s568_s10, %s562_s22 }
  0x44   : > { %p571_p2 = por %p570_p0, %p569_p10 }
  0x46   : > { %p572_p4 = pnand %p571_p2, %p565_p8 }
  0xc8   : > { %v239_v13 = vpop.xlane.xlu0 %238 }
  0xc9   : > { %v253_v14 = vmul.f32 0.00390625, %v239_v13 }
  0xca   : > { %v249_v15 = vpop.xlane.xlu1 %248 }
  0xcb   : > { %322 = vst.msk [vmem:[%s800_s12] sm:$0xff] %vm321_vm0, %v253_v14  ;;  %v255_v16 = vmul.f32 0.00390625, %v249_v15  ;;  %v257_v17 = vmul.f32 %v253_v14, %v253_v14 }
  0xcc   : > { %v242_v18 = vpop.xlane.xlu0 %241 }
  0xcd   : > { %v259_v19 = vsub.f32 %v255_v16, %v257_v17  ;;  %v254_v20 = vmul.f32 0.00390625, %v242_v18 }
  0xce   : > { %v252_v21 = vpop.xlane.xlu1 %251 }
  0xcf   : > { %v261_v22 = vmax.f32 %v259_v19, 0.0  ;;  %323 = vst.msk [vmem:[%s800_s12 + $0x8] sm:$0xff] %vm321_vm0, %v254_v20  ;;  %v256_v23 = vmul.f32 0.00390625, %v252_v21  ;;  %v258_v24 = vmul.f32 %v254_v20, %v254_v20 }
  0xd1   : > { %v263_v25 = vadd.f32 1e-05, %v261_v22  ;;  %v260_v26 = vsub.f32 %v256_v23, %v258_v24 }
  0xd3   : > { %524 = vrsqrt.f32 %v263_v25  ;;  %v262_v27 = vmax.f32 %v260_v26, 0.0  ;;  %vm267_vm1 = vcmp.eq.f32.partialorder %v263_v25, inf  ;;  %v270_v31 = vand.u32 2147483648, %v263_v25 }
  0xd4   : > { %vm269_vm3 = vcmp.eq.f32.partialorder %v263_v25, 0.0 }
  0xd5   : > { %v264_v28 = vadd.f32 1e-05, %v262_v27 }
  0xd7   : > { %526 = vrsqrt.f32 %v264_v28  ;;  %vm274_vm4 = vcmp.eq.f32.partialorder %v264_v28, inf  ;;  %v277_v36 = vand.u32 2147483648, %v264_v28  ;;  %vm276_vm5 = vcmp.eq.f32.partialorder %v264_v28, 0.0 }
  0xdd   : > { %v525_v29 = vpop.eup %524 }
  0xde   : > { %v266_v30 = vmul.f32 %v525_v29, %v263_v25 }
  0xe0   : > { %v268_v32 = vsel %vm267_vm1, %v263_v25, %v266_v30 }
  0xe1   : > { %v527_v33 = vpop.eup %526  ;;  %v271_v34 = vsel %vm269_vm3, %v270_v31, %v268_v32 }
  0xe2   : > { %v273_v35 = vmul.f32 %v527_v33, %v264_v28  ;;  %528 = vrcp.f32 %v271_v34  ;;  %325 = vst.msk [vmem:[%s800_s12] sm:$0xff] %vm324_vm2, %v271_v34 }
  0xe4   : > { %v275_v37 = vsel %vm274_vm4, %v264_v28, %v273_v35 }
  0xe5   : > { %v278_v38 = vsel %vm276_vm5, %v277_v36, %v275_v37 }
  0xe6   : > { %530 = vrcp.f32 %v278_v38  ;;  %326 = vst.msk [vmem:[%s800_s12 + $0x8] sm:$0xff] %vm324_vm2, %v278_v38 }
  0xec   : > { %v529_v40 = vpop.eup %528 }
  0xed   : > { %v283_v41 = vmul.f32 %v529_v40, %v281_v39 }
  0xef   : > { %291 = vperm.xlu0 %522, %v283_v41   ;;  %v285_v44 = vmul.f32 %v283_v41, %v253_v14 }
  0xf0   : > { %v531_v42 = vpop.eup %530 }
  0xf1   : > { %v284_v43 = vmul.f32 %v531_v42, %v281_v39  ;;  %v287_v46 = vsub.f32 %v282_v45, %v285_v44 }
  0xf3   : > { %296 = vperm.xlu1 %523, %v284_v43   ;;  %v286_v47 = vmul.f32 %v284_v43, %v254_v20 }
  0xf5   : > { %v288_v48 = vsub.f32 %v282_v45, %v286_v47 }
  0xf7   : > { %305 = vperm.xlu1 %523, %v287_v46  }
  0xfb   : > { %310 = vperm.xlu1 %523, %v288_v48  }
 0x16e   : > { %v292_v49 = vpop.permute.xlu0 %291 }
 0x16f   : > { %v299_v51 = vmul.f32 %v292_v49, %v776_v0  ;;  %v300_v52 = vmul.f32 %v292_v49, %v778_v1 }
 0x172   : > { %v297_v50 = vpop.permute.xlu1 %296 }
 0x173   : > { %v301_v56 = vmul.f32 %v297_v50, %v780_v2  ;;  %v302_v57 = vmul.f32 %v297_v50, %v788_v6 }
 0x176   : > { %v306_v53 = vpop.permute.xlu1 %305 }
 0x177   : > { %v313_v54 = vadd.f32 %v306_v53, %v299_v51  ;;  %v314_v55 = vadd.f32 %v306_v53, %v300_v52 }
 0x179   : > { %317 = vst [vmem:[%s217_s5] sm:$0xff] %v313_v54  ;;  %318 = vst [vmem:[%s217_s5 + $0x8] sm:$0xff] %v314_v55 }
 0x17a   : > { %v311_v58 = vpop.permute.xlu1 %310 }
 0x17b   : > { %v315_v59 = vadd.f32 %v311_v58, %v301_v56  ;;  %v316_v60 = vadd.f32 %v311_v58, %v302_v57 }
 0x17d   : > { %319 = vst [vmem:[%s217_s5 + $0x10] sm:$0xff] %v315_v59  ;;  %320 = vst [vmem:[%s217_s5 + $0x18] sm:$0xff] %v316_v60 }
 0x17e   : > { %575 = shalt.err (!%p572_p4)
}
 0x17f   : > { %s576_s11 = scalar_lea.hbm %s824_s20, 512  ;;  %s580_s25 = scalar_lea.hbm %s871_s3, 1024 }
 0x180   : > { %p577_p5 = scmp.ne.s32.totalorder %s824_s20, %s576_s11  ;;  %p581_p1 = scmp.lt.u32.totalorder %s824_s20, %s871_s3 }
 0x181   : > { %p582_p3 = scmp.lt.u32.totalorder %s580_s25, %s576_s11  ;;  %p584_p11 = scmp.lt.u32.totalorder %s576_s11, %s824_s20 }
 0x182   : > { %p578_p7 = pnand %p577_p5, %p879_p12 }
 0x183   : > { %p583_p6 = por %p582_p3, %p581_p1 }
 0x184   : > { %p579_p9 = pneg %p578_p7 }
 0x185   : > { %p585_p13 = por %p584_p11, %p583_p6 }
 0x187   : > { %p586_p8 = pnand %p585_p13, %p579_p9 }
 0x189   : > { %589 = shalt.err (!%p586_p8)
}
 0x18a   : > { %s635_s5 = smov 256   ;;  %s636_s7 = smov 16  }
 0x18b   : > { %473 = dma.vmem_to_hbm [thread:$0]  (%p879_p12), %s819_s6, 512, %s824_s20, %s328_s19, %s635_s5, %s635_s5, %s636_s7  }
 0x18c PF: > { %s366_s9 = sand.u32 1, %s616_s15   ;;  %p880_p10 = scmp.ne.s32.totalorder %s877_s28, 0 }
 0x18d   : > { %p881_p0 = scmp.ge.s32.totalorder %s628_s18, 2  ;;  %s367_s14 = scalar_lea.sflag [#allocation4], %s366_s9 }
 0x18f   : > { %p480_p2 = pnand %p881_p0, %p880_p10 }
 0x191   : > { %611 = dma.done.wait (!%p480_p2), %s367_s14, 512  }
 0x192   : > { %613 = vsyncadd (!%p480_p2), %s367_s14, 4294966784  ;;  %p18_p4 = scmp.ge.s32.totalorder %s687_s21, 4   ;;  %s882_s15 = smov %s620_s16 }
 0x193   : > { %s883_s16 = smov %s624_s17  ;;  %s884_s17 = smov %s699_s24 }
 0x194   : > { %s885_s18 = smov %s687_s21  ;;  %20 = sbr.rel (!%p18_p4) target bundleno = 5 (0x5), region = 89 }
 0x19b   :  { %380 = vsyncpa [#allocation3], 1 }
 0x19c   :  { %382 = vsyncpa [#allocation3 + $0x1], 1 }
 0x19d   :  { %383 = vsyncpa [#allocation4], 1 }
 0x19e   :  { %385 = vsyncpa [#allocation4 + $0x1], 1 }

</bundles_post_ra>
